<compile_context>
chip_gen: v5e
topology: v5e:2x2
jax: 0.10.0
libtpu: 0.0.40
codegen_flags: <defaults>
</compile_context>

<pallas_src>
import functools

import jax
import jax.numpy as jnp
from jax.experimental import pallas as pl
from jax.experimental.pallas import tpu as pltpu


# --------------------------------------------------------------------------
# VMEM-aware tiling helpers
# --------------------------------------------------------------------------
def _vmem_budget():
    """(tile_budget_bytes, vmem_limit_bytes), generation-aware.

    v5e/v6e have 128 MiB physical VMEM, v7x only 64 MiB; size the per-step live
    set against ~half of physical capacity and raise the scoped-VMEM limit
    accordingly (the defaults are only 16/32 MiB)."""
    cap = 64 * 1024 * 1024  # conservative fallback (v7x-sized)
    try:
        cap = int(pltpu.get_tpu_info().vmem_capacity_bytes)
    except Exception:
        pass
    return cap // 2, (cap * 3) // 4


def _pick_row_tile(rows, bytes_per_row, budget_bytes, cap=None):
    """Largest multiple-of-8 divisor of `rows` whose live set fits the budget."""
    assert rows % 8 == 0
    divs = [d for d in range(8, rows + 1, 8) if rows % d == 0]
    if cap is not None:
        capped = [d for d in divs if d <= cap]
        if capped:
            divs = capped
    fit = [d for d in divs if d * bytes_per_row <= budget_bytes]
    return max(fit) if fit else min(divs)


# --------------------------------------------------------------------------
# Kernel 1: disp_to_depth (elementwise, row-tiled, depth only)
#   The `scaled_disp` output of the torch reference is dead at every call
#   site, so it is not produced.  Used only when the smoothness loss is off
#   (otherwise scale-0 depth comes fused out of the smoothness kernel).
# --------------------------------------------------------------------------
def _disp_to_depth_kernel(disp_ref, depth_ref, *, min_depth, max_depth):
    min_disp = 1.0 / max_depth
    max_disp = 1.0 / min_depth
    d = disp_ref[...].astype(jnp.float32)
    depth_ref[...] = (1.0 / (min_disp + (max_disp - min_disp) * d)).astype(depth_ref.dtype)


def disp_to_depth(disp, min_depth, max_depth, *, block_rows=None):
    """(B,1,H,W) sigmoid disparity -> (B,1,H,W) depth."""
    shape = disp.shape
    W = shape[-1]
    rows = 1
    for s in shape[:-1]:
        rows *= s
    flat = disp.reshape(rows, W)
    pad = (-rows) % 8                     # pad instead of one giant full block
    if pad:
        flat = jnp.concatenate([flat, jnp.zeros((pad, W), flat.dtype)], axis=0)
    rows_p = rows + pad

    tile_budget, vmem_limit = _vmem_budget()
    # per tile row: input x2 buffers + output x2 buffers + ~2 f32 temporaries
    bytes_per_row = 6 * W * 4
    tr = _pick_row_tile(rows_p, bytes_per_row, tile_budget, cap=block_rows)

    kernel = functools.partial(_disp_to_depth_kernel,
                               min_depth=float(min_depth), max_depth=float(max_depth))
    depth = pl.pallas_call(
        kernel,
        out_shape=jax.ShapeDtypeStruct((rows_p, W), disp.dtype),
        grid=(rows_p // tr,),
        in_specs=[pl.BlockSpec((tr, W), lambda i: (i, 0))],
        out_specs=pl.BlockSpec((tr, W), lambda i: (i, 0)),
        compiler_params=pltpu.CompilerParams(
            dimension_semantics=("parallel",), vmem_limit_bytes=vmem_limit),
    )(flat)
    if pad:
        depth = depth[:rows]
    return depth.reshape(shape)


# --------------------------------------------------------------------------
# Kernel 2: fused bilinear upsample + disp_to_depth (s > 0 path)
#   Separable bilinear resize as matmuls with precomputed interpolation
#   matrices (exact jax.image.resize / align_corners=False weights).
# --------------------------------------------------------------------------
def _interp_matrices(h, w, out_h, out_w):
    wh = jax.image.resize(jnp.eye(h, dtype=jnp.float32), (out_h, h), method='bilinear')
    ww = jax.image.resize(jnp.eye(w, dtype=jnp.float32), (out_w, w), method='bilinear').T
    return wh, ww


def _resize_disp_to_depth_kernel(disp_ref, wh_ref, ww_ref, depth_ref,
                                 *, min_depth, max_depth):
    wh = wh_ref[...]                               # (th, h)
    ww = ww_ref[...]                               # (w, W)
    B = disp_ref.shape[0]
    th = wh.shape[0]
    # Row interpolation: B small (th,h)x(h,w) matmuls (no broadcast_to of the
    # weight matrices), concatenated so the expensive column interpolation runs
    # as ONE tall (B*th, w) x (w, W) MXU matmul.
    # NOTE: operands could be cast to bf16 (v6e/v7x MXU) if ~1e-3 depth error
    # is acceptable; kept exact f32 here (kernel is HBM-write bound anyway).
    rows = jnp.concatenate(
        [jnp.dot(wh, disp_ref[b].astype(jnp.float32),
                 preferred_element_type=jnp.float32,
                 precision=jax.lax.Precision.HIGHEST)
         for b in range(B)], axis=0)               # (B*th, w)
    full = jnp.dot(rows, ww, preferred_element_type=jnp.float32,
                   precision=jax.lax.Precision.HIGHEST)            # (B*th, W)
    min_disp = 1.0 / max_depth
    max_disp = 1.0 / min_depth
    depth = 1.0 / (min_disp + (max_disp - min_disp) * full)
    for b in range(B):
        depth_ref[b] = depth[b * th:(b + 1) * th].astype(depth_ref.dtype)


def resize_disp_to_depth(disp, out_h, out_w, min_depth, max_depth, *, block_rows=None):
    """(B,1,h,w) disparity -> bilinear upsample to (out_h,out_w) -> depth."""
    B, C, h, w = disp.shape
    assert C == 1
    if out_h % 8 != 0:
        # TODO(synk): odd output heights fall back to the XLA resize path.
        up = jax.image.resize(disp, (B, 1, out_h, out_w), method='bilinear')
        return disp_to_depth(up, min_depth, max_depth, block_rows=block_rows)

    wh, ww = _interp_matrices(h, w, out_h, out_w)

    tile_budget, vmem_limit = _vmem_budget()
    # grid-resident operands: low-res disp (x2 buffers + f32 copy), ww (x2)
    fixed = 3 * B * h * w * 4 + 2 * w * out_w * 4
    # per output row: wh (x2 buffers), output (x2), rows temp, full/depth temps
    per_row = 2 * h * 4 + 4 * B * out_w * 4 + B * w * 4
    th = _pick_row_tile(out_h, per_row, max(tile_budget - fixed, 0), cap=block_rows)

    kernel = functools.partial(_resize_disp_to_depth_kernel,
                               min_depth=float(min_depth), max_depth=float(max_depth))
    depth = pl.pallas_call(
        kernel,
        out_shape=jax.ShapeDtypeStruct((B, out_h, out_w), disp.dtype),
        grid=(out_h // th,),
        in_specs=[
            pl.BlockSpec((B, h, w), lambda i: (0, 0, 0)),
            pl.BlockSpec((th, h), lambda i: (i, 0)),
            pl.BlockSpec((w, out_w), lambda i: (0, 0)),
        ],
        out_specs=pl.BlockSpec((B, th, out_w), lambda i: (0, i, 0)),
        compiler_params=pltpu.CompilerParams(
            dimension_semantics=("parallel",), vmem_limit_bytes=vmem_limit),
    )(disp.reshape(B, h, w), wh, ww)
    return depth.reshape(B, 1, out_h, out_w)


# --------------------------------------------------------------------------
# Kernel 3: fused edge-aware smoothness loss (+ scale-0 disp_to_depth)
#   Fully "parallel" grid over row tiles: each tile writes lane-dense per-image
#   partial sums (sum_d, sum_gx, sum_gy) and its depth block; the /(mean+1e-7)
#   normalisation and the final reduction happen in the wrapper.  The y-pair
#   that straddles a tile boundary uses a one-row-overlap input.
# --------------------------------------------------------------------------
def _smooth_depth_kernel(disp_ref, img_ref, pd_ref, pi_ref, part_ref, depth_ref,
                         *, min_depth, max_depth):
    i = pl.program_id(0)
    B = disp_ref.shape[0]
    W = disp_ref.shape[3]
    CI = img_ref.shape[1]

    d = disp_ref[...].astype(jnp.float32)                     # (B,1,th,W)

    # ---- fused disp_to_depth (scale 0) ----
    min_disp = 1.0 / max_depth
    max_disp = 1.0 / min_depth
    depth_ref[...] = (1.0 / (min_disp + (max_disp - min_disp) * d)).astype(depth_ref.dtype)

    d2 = d[:, 0]                                              # (B, th, W)
    d_next = pltpu.roll(d2, shift=W - 1, axis=2)              # column c+1 at c (XLU)

    # edge weights, channel-by-channel (only one image channel live at a time)
    gix = giy = giy_b = None
    for c in range(CI):
        ic = img_ref[:, c].astype(jnp.float32)                # (B, th, W)
        ax = jnp.abs(ic - pltpu.roll(ic, shift=W - 1, axis=2))
        ay = jnp.abs(ic[:, :-1, :] - ic[:, 1:, :])
        ab = jnp.abs(pi_ref[0, :, c, :].astype(jnp.float32) - ic[:, 0, :])
        gix = ax if gix is None else gix + ax
        giy = ay if giy is None else giy + ay
        giy_b = ab if giy_b is None else giy_b + ab
    inv_ci = 1.0 / float(CI)

    # x-gradient: wrapped last column masked with a tiny (1,1,W) lane iota
    gx = jnp.abs(d2 - d_next) * jnp.exp(-gix * inv_ci)
    lane = jax.lax.broadcasted_iota(jnp.int32, (1, 1, W), 2)
    gx = jnp.where(lane < W - 1, gx, 0.0)

    # y-gradient inside the tile
    gy = jnp.abs(d2[:, :-1, :] - d2[:, 1:, :]) * jnp.exp(-giy * inv_ci)

    # y-gradient pair straddling the tile boundary (previous tile's last row,
    # supplied as a one-row overlap input; zeroed on the first tile)
    pd = pd_ref[0, :, 0, :].astype(jnp.float32)               # (B, W)
    gy_b = jnp.abs(pd - d2[:, 0, :]) * jnp.exp(-giy_b * inv_ci)
    gy_b = jnp.where(i > 0, gy_b, 0.0)

    # per-tile, per-image, lane-dense partial sums (reduced in the wrapper)
    part_ref[0, 0] = jnp.sum(d2, axis=1)
    part_ref[0, 1] = jnp.sum(gx, axis=1)
    part_ref[0, 2] = jnp.sum(gy, axis=1) + gy_b


def _smooth_loss_xla(disp, img):
    """Plain-XLA smoothness for the tiny low-resolution scales (Pallas launch
    overhead dominates there) and as the demo reference."""
    d = disp.astype(jnp.float32)
    img = img.astype(jnp.float32)
    mean_d = jnp.mean(d, axis=(2, 3), keepdims=True)
    nd = d / (mean_d + 1e-7)
    gdx = jnp.abs(nd[:, :, :, :-1] - nd[:, :, :, 1:])
    gdy = jnp.abs(nd[:, :, :-1, :] - nd[:, :, 1:, :])
    gix = jnp.mean(jnp.abs(img[:, :, :, :-1] - img[:, :, :, 1:]), axis=1, keepdims=True)
    giy = jnp.mean(jnp.abs(img[:, :, :-1, :] - img[:, :, 1:, :]), axis=1, keepdims=True)
    return jnp.mean(gdx * jnp.exp(-gix)) + jnp.mean(gdy * jnp.exp(-giy))


def smooth_and_depth(disp, img, min_depth, max_depth, *, block_rows=None):
    """Full-resolution fused pass: smoothness loss + depth.  Returns (loss, depth)."""
    B, C, H, W = disp.shape
    assert C == 1
    CI = img.shape[1]
    if H % 8 != 0:
        # TODO(synk): odd heights fall back to the XLA smoothness path.
        return _smooth_loss_xla(disp, img), disp_to_depth(disp, min_depth, max_depth)

    tile_budget, vmem_limit = _vmem_budget()
    # per tile row: disp+img inputs (x2 buffers), depth output (x2), ~5 f32 temps
    per_row = (2 * (1 + CI) * B + 2 * B + 5 * B) * W * 4
    fixed = 4 * B * (1 + CI + 3) * W * 4          # prev-row + partial buffers
    th = _pick_row_tile(H, per_row, max(tile_budget - fixed, 0), cap=block_rows)
    nt = H // th

    # previous-tile last rows (one-row overlap), laid out (nt, B, C, W) so each
    # block spans full (sublane, lane) extents; tile 0 gets a dummy row.
    if nt > 1:
        pd = jnp.concatenate([disp[:, :, :1, :], disp[:, :, th - 1:H - 1:th, :]], axis=2)
        pi = jnp.concatenate([img[:, :, :1, :], img[:, :, th - 1:H - 1:th, :]], axis=2)
    else:
        pd = disp[:, :, :1, :]
        pi = img[:, :, :1, :]
    pd = jnp.transpose(pd, (2, 0, 1, 3))          # (nt, B, 1, W)
    pi = jnp.transpose(pi, (2, 0, 1, 3))          # (nt, B, CI, W)

    kernel = functools.partial(_smooth_depth_kernel,
                               min_depth=float(min_depth), max_depth=float(max_depth))
    parts, depth = pl.pallas_call(
        kernel,
        out_shape=(jax.ShapeDtypeStruct((nt, 3, B, W), jnp.float32),
                   jax.ShapeDtypeStruct((B, 1, H, W), disp.dtype)),
        grid=(nt,),
        in_specs=[
            pl.BlockSpec((B, 1, th, W), lambda i: (0, 0, i, 0)),
            pl.BlockSpec((B, CI, th, W), lambda i: (0, 0, i, 0)),
            pl.BlockSpec((1, B, 1, W), lambda i: (i, 0, 0, 0)),
            pl.BlockSpec((1, B, CI, W), lambda i: (i, 0, 0, 0)),
        ],
        out_specs=(
            pl.BlockSpec((1, 3, B, W), lambda i: (i, 0, 0, 0)),
            pl.BlockSpec((B, 1, th, W), lambda i: (0, 0, i, 0)),
        ),
        compiler_params=pltpu.CompilerParams(
            dimension_semantics=("parallel",), vmem_limit_bytes=vmem_limit),
    )(disp, img, pd, pi)

    sums = jnp.sum(parts, axis=(0, 3))            # (3, B): [sum_d, sum_gx, sum_gy]
    inv_norm = 1.0 / (sums[0] / float(H * W) + 1e-7)
    loss_x = jnp.sum(sums[1] * inv_norm) / float(B * H * (W - 1))
    loss_y = jnp.sum(sums[2] * inv_norm) / float(B * (H - 1) * W)
    return loss_x + loss_y, depth


# --------------------------------------------------------------------------
# Pose transform: plain XLA on purpose (per review — a standalone Pallas kernel
# here is pure launch overhead: all operands fit in a fraction of one vreg).
# --------------------------------------------------------------------------
def rot_from_axisangle(vec):
    v = vec.reshape(-1, 3).astype(jnp.float32)
    angle = jnp.sqrt(jnp.sum(v * v, axis=-1, keepdims=True))
    axis = v / (angle + 1e-7)
    ca = jnp.cos(angle)
    sa = jnp.sin(angle)
    C = 1.0 - ca
    x, y, z = axis[:, 0:1], axis[:, 1:2], axis[:, 2:3]
    xs, ys, zs = x * sa, y * sa, z * sa
    xC, yC, zC = x * C, y * C, z * C
    xyC, yzC, zxC = x * yC, y * zC, z * xC
    rot = jnp.concatenate([
        x * xC + ca, xyC - zs, zxC + ys,
        xyC + zs, y * yC + ca, yzC - xs,
        zxC - ys, yzC + xs, z * zC + ca], axis=-1)
    return rot.reshape(-1, 3, 3)


def transformation_from_parameters(axisangle, translation, invert=False):
    """axisangle/translation: (B,1,3) -> (B,4,4); matches the torch reference."""
    R3 = rot_from_axisangle(axisangle)
    t = translation.reshape(-1, 3).astype(jnp.float32)
    if invert:
        R3 = jnp.swapaxes(R3, 1, 2)
        tcol = -jnp.einsum('nij,nj->ni', R3, t)
    else:
        tcol = t
    N = R3.shape[0]
    top = jnp.concatenate([R3, tcol[:, :, None]], axis=2)                  # (N,3,4)
    bottom = jnp.broadcast_to(
        jnp.array([0.0, 0.0, 0.0, 1.0], jnp.float32)[None, None, :], (N, 1, 4))
    return jnp.concatenate([top, bottom], axis=1)


# --------------------------------------------------------------------------
# TrainerParallel forward (Pallas-backed)
# --------------------------------------------------------------------------
class TrainerParallelPallas:
    def __init__(self, options):
        self.opt = options
        # demo-only cap to force multi-tile grids at tiny shapes; None in production
        self.block_rows = getattr(options, 'pallas_block_rows', None)
        self.loss_functions = {}
        if self.opt.disparity_smoothness:
            self.loss_functions[self.compute_smoothness] = self.opt.disparity_smoothness
        # TODO(synk): compute_reprojection needs SSIM + F.grid_sample, and
        #             compute_semantic_distil / compute_sgt_loss need the
        #             segmentation network — none are provided, so omitted.

    def forward(self, inputs):
        outputs = self.compute_outputs(inputs)
        losses = {fn.__name__: fn(inputs, outputs) * w
                  for fn, w in self.loss_functions.items()}
        losses['loss'] = sum(losses.values()) if losses else jnp.asarray(0.0, jnp.float32)
        outputs = {k: jax.lax.stop_gradient(v) for k, v in outputs.items()}
        return losses, outputs

    def compute_outputs(self, inputs):
        outputs = {}

        # TODO(synk): ResnetEncoder / PoseDecoder not provided; pose-net outputs
        #             (axisangle, translation) are taken directly from `inputs`.
        for fid in self.opt.frame_ids[1:]:
            axisangle = inputs['axisangle', fid]        # (B, 2, 1, 3)
            translation = inputs['translation', fid]    # (B, 2, 1, 3)
            outputs['axisangle', fid] = axisangle
            outputs['T', fid] = transformation_from_parameters(
                axisangle[:, 0], translation[:, 0], invert=fid < 0)

        # TODO(synk): DepthDecoder / CMA not provided; multi-scale disparities
        #             are taken directly from `inputs` as the decoder output.
        smooth_on = bool(self.opt.disparity_smoothness)
        for s in self.opt.scales:
            disp = inputs['disp', s]
            outputs['disp', s] = disp
            if s > 0:
                depth = resize_disp_to_depth(
                    disp, self.opt.height, self.opt.width,
                    self.opt.min_depth, self.opt.max_depth,
                    block_rows=self.block_rows)
            elif smooth_on:
                # fused: one full-resolution pass -> depth AND smoothness loss
                loss0, depth = smooth_and_depth(
                    disp, inputs['color', 0, 0],
                    self.opt.min_depth, self.opt.max_depth,
                    block_rows=self.block_rows)
                outputs['_smooth_loss_s0'] = loss0
            else:
                depth = disp_to_depth(
                    disp, self.opt.min_depth, self.opt.max_depth,
                    block_rows=self.block_rows)
            outputs['depth', 0, s] = depth

        # TODO(synk): BackprojectDepth / Project3D not provided; the warped
        #             'sample' / 'next_depth' coordinate grids are omitted.
        return outputs

    def compute_smoothness(self, inputs, outputs):
        total = 0.0
        for s in self.opt.scales:
            if s == 0 and '_smooth_loss_s0' in outputs:
                l = outputs['_smooth_loss_s0']          # from the fused kernel
            else:
                l = _smooth_loss_xla(outputs['disp', s], inputs['color', 0, s])
            total = total + l / (2 ** s)
        return total


# --------------------------------------------------------------------------
# Demo
# --------------------------------------------------------------------------
if __name__ == "__main__":
    class Opt:
        pass

    opt = Opt()
    opt.batch_size = 2
    opt.height = 32
    opt.width = 128
    opt.scales = [0, 1, 2]
    opt.frame_ids = [0, -1, 1]
    opt.min_depth = 0.1
    opt.max_depth = 100.0
    opt.disparity_smoothness = 1e-3
    opt.pallas_block_rows = 8   # demo-only: forces multi-tile grids; use None in production

    B, H, W = opt.batch_size, opt.height, opt.width
    keys = iter(jax.random.split(jax.random.PRNGKey(0), 32))

    inputs = {}
    for s in opt.scales:
        h, w = H >> s, W >> s
        inputs['color', 0, s] = jax.random.uniform(next(keys), (B, 3, h, w), jnp.float32)
        inputs['disp', s] = jax.nn.sigmoid(
            jax.random.normal(next(keys), (B, 1, h, w), jnp.float32))
    for fid in opt.frame_ids[1:]:
        inputs['color', fid, 0] = jax.random.uniform(next(keys), (B, 3, H, W), jnp.float32)
        inputs['axisangle', fid] = 0.01 * jax.random.normal(
            next(keys), (B, 2, 1, 3), jnp.float32)
        inputs['translation', fid] = 0.01 * jax.random.normal(
            next(keys), (B, 2, 1, 3), jnp.float32)

    trainer = TrainerParallelPallas(opt)
    losses, outputs = trainer.forward(inputs)
    jax.block_until_ready(losses['loss'])

    # ---- correctness checks against pure-JAX references ----
    min_disp, max_disp = 1.0 / opt.max_depth, 1.0 / opt.min_depth

    def ref_depth(d):
        return 1.0 / (min_disp + (max_disp - min_disp) * d)

    # scale 0: fused smooth+depth kernel
    assert jnp.allclose(outputs['depth', 0, 0], ref_depth(inputs['disp', 0]),
                        rtol=1e-5, atol=1e-5)

    # standalone disp_to_depth kernel (path used when smoothness is disabled)
    d0 = disp_to_depth(inputs['disp', 0], opt.min_depth, opt.max_depth)
    assert jnp.allclose(d0, ref_depth(inputs['disp', 0]), rtol=1e-5, atol=1e-5)

    # s > 0: fused upsample+depth kernel vs matrix-resize reference
    for s in [1, 2]:
        h, w = H >> s, W >> s
        wh_m, ww_m = _interp_matrices(h, w, H, W)
        up = jnp.einsum('rh,bchw,wk->bcrk', wh_m, inputs['disp', s], ww_m,
                        precision=jax.lax.Precision.HIGHEST)
        assert jnp.allclose(outputs['depth', 0, s], ref_depth(up), rtol=1e-3, atol=1e-3)

    # smoothness loss vs pure-JAX reference
    ref_smooth = sum(_smooth_loss_xla(inputs['disp', s], inputs['color', 0, s]) / 2 ** s
                     for s in opt.scales) * opt.disparity_smoothness
    assert jnp.allclose(losses['compute_smoothness'], ref_smooth, rtol=1e-4, atol=1e-7)

    # pose: invert=True must be the matrix inverse of invert=False
    aa = inputs['axisangle', 1][:, 0]
    tr = inputs['translation', 1][:, 0]
    T_fwd = transformation_from_parameters(aa, tr, invert=False)
    T_inv = transformation_from_parameters(aa, tr, invert=True)
    eye = jnp.broadcast_to(jnp.eye(4, dtype=jnp.float32), (B, 4, 4))
    assert jnp.allclose(jnp.einsum('nij,njk->nik', T_inv, T_fwd), eye, atol=1e-5)

    jax.block_until_ready(outputs['T', 1])
    jax.block_until_ready(outputs['T', -1])
    jax.block_until_ready(outputs['depth', 0, 1])
    jax.block_until_ready(outputs['depth', 0, 2])

    print("KERNEL_OK")
</pallas_src>

<mosaic_0001>
module attributes {stable_mosaic.version = 11 : i64} {
  func.func @_smooth_depth_kernel(%arg0: i32, %arg1: memref<2x1x8x128xf32, #tpu.memory_space<vmem>>, %arg2: memref<2x3x8x128xf32, #tpu.memory_space<vmem>>, %arg3: memref<1x2x1x128xf32, #tpu.memory_space<vmem>>, %arg4: memref<1x2x3x128xf32, #tpu.memory_space<vmem>>, %arg5: memref<1x3x2x128xf32, #tpu.memory_space<vmem>>, %arg6: memref<2x1x8x128xf32, #tpu.memory_space<vmem>>) attributes {dimension_semantics = [#tpu.dimension_semantics<parallel>], iteration_bounds = array<i64: 4>, scalar_prefetch = 0 : i64, scratch_operands = 0 : i64, tpu.core_type = #tpu.core_type<tc>, window_params = [{transform_indices = @transform_0, window_bounds = array<i64: 2, 1, 8, 128>}, {transform_indices = @transform_1, window_bounds = array<i64: 2, 3, 8, 128>}, {transform_indices = @transform_2, window_bounds = array<i64: 1, 2, 1, 128>}, {transform_indices = @transform_3, window_bounds = array<i64: 1, 2, 3, 128>}, {transform_indices = @transform_4, window_bounds = array<i64: 1, 3, 2, 128>}, {transform_indices = @transform_5, window_bounds = array<i64: 2, 1, 8, 128>}]} {
    %c0 = arith.constant 0 : index
    %c0_0 = arith.constant 0 : index
    %c0_1 = arith.constant 0 : index
    %c0_2 = arith.constant 0 : index
    %0 = vector.load %arg1[%c0, %c0_0, %c0_1, %c0_2] : memref<2x1x8x128xf32, #tpu.memory_space<vmem>>, vector<2x1x8x128xf32>
    %cst = arith.constant 9.98999977 : f32
    %1 = vector.broadcast %cst : f32 to vector<2x1x8x128xf32>
    %2 = arith.mulf %1, %0 : vector<2x1x8x128xf32>
    %cst_3 = arith.constant 0.00999999977 : f32
    %3 = vector.broadcast %cst_3 : f32 to vector<2x1x8x128xf32>
    %4 = arith.addf %3, %2 : vector<2x1x8x128xf32>
    %cst_4 = arith.constant 1.000000e+00 : f32
    %5 = vector.broadcast %cst_4 : f32 to vector<2x1x8x128xf32>
    %6 = arith.divf %5, %4 : vector<2x1x8x128xf32>
    %c0_5 = arith.constant 0 : index
    %c0_6 = arith.constant 0 : index
    %c0_7 = arith.constant 0 : index
    %c0_8 = arith.constant 0 : index
    %7 = vector.load %arg6[%c0_5, %c0_6, %c0_7, %c0_8] : memref<2x1x8x128xf32, #tpu.memory_space<vmem>>, vector<2x1x8x128xf32>
    tpu.vector_store %arg6[%c0_5, %c0_6, %c0_7, %c0_8], %6 {strides = array<i32>} : memref<2x1x8x128xf32, #tpu.memory_space<vmem>>, vector<2x1x8x128xf32>,
    %8 = vector.shape_cast %0 : vector<2x1x8x128xf32> to vector<2x8x128xf32>
    %c127_i32 = arith.constant 127 : i32
    %9 = tpu.dynamic_rotate %8 by %c127_i32 dim 2 : vector<2x8x128xf32>, i32 -> vector<2x8x128xf32>
    %c0_9 = arith.constant 0 : index
    %c0_10 = arith.constant 0 : index
    %c0_11 = arith.constant 0 : index
    %c0_12 = arith.constant 0 : index
    %10 = vector.load %arg2[%c0_9, %c0_10, %c0_11, %c0_12] : memref<2x3x8x128xf32, #tpu.memory_space<vmem>>, vector<2x1x8x128xf32>
    %11 = vector.shape_cast %10 : vector<2x1x8x128xf32> to vector<2x8x128xf32>
    %c127_i32_13 = arith.constant 127 : i32
    %12 = tpu.dynamic_rotate %11 by %c127_i32_13 dim 2 : vector<2x8x128xf32>, i32 -> vector<2x8x128xf32>
    %13 = arith.subf %11, %12 : vector<2x8x128xf32>
    %14 = math.absf %13 : vector<2x8x128xf32>
    %15 = vector.extract_strided_slice %11 {offsets = [0, 0, 0], sizes = [2, 7, 128], strides = [1, 1, 1]} : vector<2x8x128xf32> to vector<2x7x128xf32>
    %16 = vector.extract_strided_slice %11 {offsets = [0, 1, 0], sizes = [2, 7, 128], strides = [1, 1, 1]} : vector<2x8x128xf32> to vector<2x7x128xf32>
    %17 = arith.subf %15, %16 : vector<2x7x128xf32>
    %18 = math.absf %17 : vector<2x7x128xf32>
    %c0_14 = arith.constant 0 : index
    %c0_15 = arith.constant 0 : index
    %c0_16 = arith.constant 0 : index
    %c0_17 = arith.constant 0 : index
    %19 = vector.load %arg4[%c0_14, %c0_15, %c0_16, %c0_17] : memref<1x2x3x128xf32, #tpu.memory_space<vmem>>, vector<1x2x1x128xf32>
    %20 = vector.shape_cast %19 : vector<1x2x1x128xf32> to vector<2x128xf32>
    %21 = vector.extract_strided_slice %11 {offsets = [0, 0, 0], sizes = [2, 1, 128], strides = [1, 1, 1]} : vector<2x8x128xf32> to vector<2x1x128xf32>
    %22 = vector.shape_cast %21 : vector<2x1x128xf32> to vector<2x128xf32>
    %23 = arith.subf %20, %22 : vector<2x128xf32>
    %24 = math.absf %23 : vector<2x128xf32>
    %c0_18 = arith.constant 0 : index
    %c1 = arith.constant 1 : index
    %c0_19 = arith.constant 0 : index
    %c0_20 = arith.constant 0 : index
    %25 = vector.load %arg2[%c0_18, %c1, %c0_19, %c0_20] : memref<2x3x8x128xf32, #tpu.memory_space<vmem>>, vector<2x1x8x128xf32>
    %26 = vector.shape_cast %25 : vector<2x1x8x128xf32> to vector<2x8x128xf32>
    %c127_i32_21 = arith.constant 127 : i32
    %27 = tpu.dynamic_rotate %26 by %c127_i32_21 dim 2 : vector<2x8x128xf32>, i32 -> vector<2x8x128xf32>
    %28 = arith.subf %26, %27 : vector<2x8x128xf32>
    %29 = math.absf %28 : vector<2x8x128xf32>
    %30 = vector.extract_strided_slice %26 {offsets = [0, 0, 0], sizes = [2, 7, 128], strides = [1, 1, 1]} : vector<2x8x128xf32> to vector<2x7x128xf32>
    %31 = vector.extract_strided_slice %26 {offsets = [0, 1, 0], sizes = [2, 7, 128], strides = [1, 1, 1]} : vector<2x8x128xf32> to vector<2x7x128xf32>
    %32 = arith.subf %30, %31 : vector<2x7x128xf32>
    %33 = math.absf %32 : vector<2x7x128xf32>
    %c0_22 = arith.constant 0 : index
    %c0_23 = arith.constant 0 : index
    %c1_24 = arith.constant 1 : index
    %c0_25 = arith.constant 0 : index
    %34 = vector.load %arg4[%c0_22, %c0_23, %c1_24, %c0_25] : memref<1x2x3x128xf32, #tpu.memory_space<vmem>>, vector<1x2x1x128xf32>
    %35 = vector.shape_cast %34 : vector<1x2x1x128xf32> to vector<2x128xf32>
    %36 = vector.extract_strided_slice %26 {offsets = [0, 0, 0], sizes = [2, 1, 128], strides = [1, 1, 1]} : vector<2x8x128xf32> to vector<2x1x128xf32>
    %37 = vector.shape_cast %36 : vector<2x1x128xf32> to vector<2x128xf32>
    %38 = arith.subf %35, %37 : vector<2x128xf32>
    %39 = math.absf %38 : vector<2x128xf32>
    %40 = arith.addf %14, %29 : vector<2x8x128xf32>
    %41 = arith.addf %18, %33 : vector<2x7x128xf32>
    %42 = arith.addf %24, %39 : vector<2x128xf32>
    %c0_26 = arith.constant 0 : index
    %c2 = arith.constant 2 : index
    %c0_27 = arith.constant 0 : index
    %c0_28 = arith.constant 0 : index
    %43 = vector.load %arg2[%c0_26, %c2, %c0_27, %c0_28] : memref<2x3x8x128xf32, #tpu.memory_space<vmem>>, vector<2x1x8x128xf32>
    %44 = vector.shape_cast %43 : vector<2x1x8x128xf32> to vector<2x8x128xf32>
    %c127_i32_29 = arith.constant 127 : i32
    %45 = tpu.dynamic_rotate %44 by %c127_i32_29 dim 2 : vector<2x8x128xf32>, i32 -> vector<2x8x128xf32>
    %46 = arith.subf %44, %45 : vector<2x8x128xf32>
    %47 = math.absf %46 : vector<2x8x128xf32>
    %48 = vector.extract_strided_slice %44 {offsets = [0, 0, 0], sizes = [2, 7, 128], strides = [1, 1, 1]} : vector<2x8x128xf32> to vector<2x7x128xf32>
    %49 = vector.extract_strided_slice %44 {offsets = [0, 1, 0], sizes = [2, 7, 128], strides = [1, 1, 1]} : vector<2x8x128xf32> to vector<2x7x128xf32>
    %50 = arith.subf %48, %49 : vector<2x7x128xf32>
    %51 = math.absf %50 : vector<2x7x128xf32>
    %c0_30 = arith.constant 0 : index
    %c0_31 = arith.constant 0 : index
    %c2_32 = arith.constant 2 : index
    %c0_33 = arith.constant 0 : index
    %52 = vector.load %arg4[%c0_30, %c0_31, %c2_32, %c0_33] : memref<1x2x3x128xf32, #tpu.memory_space<vmem>>, vector<1x2x1x128xf32>
    %53 = vector.shape_cast %52 : vector<1x2x1x128xf32> to vector<2x128xf32>
    %54 = vector.extract_strided_slice %44 {offsets = [0, 0, 0], sizes = [2, 1, 128], strides = [1, 1, 1]} : vector<2x8x128xf32> to vector<2x1x128xf32>
    %55 = vector.shape_cast %54 : vector<2x1x128xf32> to vector<2x128xf32>
    %56 = arith.subf %53, %55 : vector<2x128xf32>
    %57 = math.absf %56 : vector<2x128xf32>
    %58 = arith.addf %40, %47 : vector<2x8x128xf32>
    %59 = arith.addf %41, %51 : vector<2x7x128xf32>
    %60 = arith.addf %42, %57 : vector<2x128xf32>
    %61 = arith.subf %8, %9 : vector<2x8x128xf32>
    %62 = math.absf %61 : vector<2x8x128xf32>
    %cst_34 = arith.constant 0.000000e+00 : f32
    %63 = vector.broadcast %cst_34 : f32 to vector<2x8x128xf32>
    %64 = arith.subf %63, %58 : vector<2x8x128xf32>
    %cst_35 = arith.constant 0.333333343 : f32
    %65 = vector.broadcast %cst_35 : f32 to vector<2x8x128xf32>
    %66 = arith.mulf %64, %65 : vector<2x8x128xf32>
    %67 = math.exp %66 : vector<2x8x128xf32>
    %68 = arith.mulf %62, %67 : vector<2x8x128xf32>
    %69 = tpu.iota {dimensions = array<i32: 2>} : vector<1x1x128xi32>
    %c127_i32_36 = arith.constant 127 : i32
    %70 = vector.broadcast %c127_i32_36 : i32 to vector<1x1x128xi32>
    %71 = arith.cmpi slt, %69, %70 : vector<1x1x128xi32>
    %cst_37 = arith.constant 0.000000e+00 : f32
    %72 = vector.shape_cast %71 : vector<1x1x128xi1> to vector<1x1x128xi1>
    %73 = vector.broadcast %72 : vector<1x1x128xi1> to vector<2x8x128xi1>
    %74 = vector.broadcast %cst_37 : f32 to vector<2x8x128xf32>
    %75 = arith.select %73, %68, %74 : vector<2x8x128xi1>, vector<2x8x128xf32>
    %76 = vector.extract_strided_slice %8 {offsets = [0, 0, 0], sizes = [2, 7, 128], strides = [1, 1, 1]} : vector<2x8x128xf32> to vector<2x7x128xf32>
    %77 = vector.extract_strided_slice %8 {offsets = [0, 1, 0], sizes = [2, 7, 128], strides = [1, 1, 1]} : vector<2x8x128xf32> to vector<2x7x128xf32>
    %78 = arith.subf %76, %77 : vector<2x7x128xf32>
    %79 = math.absf %78 : vector<2x7x128xf32>
    %cst_38 = arith.constant 0.000000e+00 : f32
    %80 = vector.broadcast %cst_38 : f32 to vector<2x7x128xf32>
    %81 = arith.subf %80, %59 : vector<2x7x128xf32>
    %cst_39 = arith.constant 0.333333343 : f32
    %82 = vector.broadcast %cst_39 : f32 to vector<2x7x128xf32>
    %83 = arith.mulf %81, %82 : vector<2x7x128xf32>
    %84 = math.exp %83 : vector<2x7x128xf32>
    %85 = arith.mulf %79, %84 : vector<2x7x128xf32>
    %c0_40 = arith.constant 0 : index
    %c0_41 = arith.constant 0 : index
    %c0_42 = arith.constant 0 : index
    %c0_43 = arith.constant 0 : index
    %86 = vector.load %arg3[%c0_40, %c0_41, %c0_42, %c0_43] : memref<1x2x1x128xf32, #tpu.memory_space<vmem>>, vector<1x2x1x128xf32>
    %87 = vector.shape_cast %86 : vector<1x2x1x128xf32> to vector<2x128xf32>
    %88 = vector.extract_strided_slice %8 {offsets = [0, 0, 0], sizes = [2, 1, 128], strides = [1, 1, 1]} : vector<2x8x128xf32> to vector<2x1x128xf32>
    %89 = vector.shape_cast %88 : vector<2x1x128xf32> to vector<2x128xf32>
    %90 = arith.subf %87, %89 : vector<2x128xf32>
    %91 = math.absf %90 : vector<2x128xf32>
    %cst_44 = arith.constant 0.000000e+00 : f32
    %92 = vector.broadcast %cst_44 : f32 to vector<2x128xf32>
    %93 = arith.subf %92, %60 : vector<2x128xf32>
    %cst_45 = arith.constant 0.333333343 : f32
    %94 = vector.broadcast %cst_45 : f32 to vector<2x128xf32>
    %95 = arith.mulf %93, %94 : vector<2x128xf32>
    %96 = math.exp %95 : vector<2x128xf32>
    %97 = arith.mulf %91, %96 : vector<2x128xf32>
    %c0_i32 = arith.constant 0 : i32
    %98 = arith.cmpi sgt, %arg0, %c0_i32 : i32
    %cst_46 = arith.constant 0.000000e+00 : f32
    %99 = vector.broadcast %cst_46 : f32 to vector<2x128xf32>
    %100 = arith.select %98, %97, %99 : vector<2x128xf32>
    %cst_47 = arith.constant dense<0.000000e+00> : vector<2x128xf32>
    %101 = vector.multi_reduction <add>, %8, %cst_47 [1] : vector<2x8x128xf32> to vector<2x128xf32>
    %c0_48 = arith.constant 0 : index
    %c0_49 = arith.constant 0 : index
    %c0_50 = arith.constant 0 : index
    %c0_51 = arith.constant 0 : index
    %102 = vector.load %arg5[%c0_48, %c0_49, %c0_50, %c0_51] : memref<1x3x2x128xf32, #tpu.memory_space<vmem>>, vector<1x1x2x128xf32>
    %103 = vector.shape_cast %102 : vector<1x1x2x128xf32> to vector<2x128xf32>
    %104 = vector.shape_cast %101 : vector<2x128xf32> to vector<1x1x2x128xf32>
    tpu.vector_store %arg5[%c0_48, %c0_49, %c0_50, %c0_51], %104 {strides = array<i32>} : memref<1x3x2x128xf32, #tpu.memory_space<vmem>>, vector<1x1x2x128xf32>,
    %cst_52 = arith.constant dense<0.000000e+00> : vector<2x128xf32>
    %105 = vector.multi_reduction <add>, %75, %cst_52 [1] : vector<2x8x128xf32> to vector<2x128xf32>
    %c0_53 = arith.constant 0 : index
    %c1_54 = arith.constant 1 : index
    %c0_55 = arith.constant 0 : index
    %c0_56 = arith.constant 0 : index
    %106 = vector.load %arg5[%c0_53, %c1_54, %c0_55, %c0_56] : memref<1x3x2x128xf32, #tpu.memory_space<vmem>>, vector<1x1x2x128xf32>
    %107 = vector.shape_cast %106 : vector<1x1x2x128xf32> to vector<2x128xf32>
    %108 = vector.shape_cast %105 : vector<2x128xf32> to vector<1x1x2x128xf32>
    tpu.vector_store %arg5[%c0_53, %c1_54, %c0_55, %c0_56], %108 {strides = array<i32>} : memref<1x3x2x128xf32, #tpu.memory_space<vmem>>, vector<1x1x2x128xf32>,
    %cst_57 = arith.constant dense<0.000000e+00> : vector<2x128xf32>
    %109 = vector.multi_reduction <add>, %85, %cst_57 [1] : vector<2x7x128xf32> to vector<2x128xf32>
    %110 = arith.addf %109, %100 : vector<2x128xf32>
    %c0_58 = arith.constant 0 : index
    %c2_59 = arith.constant 2 : index
    %c0_60 = arith.constant 0 : index
    %c0_61 = arith.constant 0 : index
    %111 = vector.load %arg5[%c0_58, %c2_59, %c0_60, %c0_61] : memref<1x3x2x128xf32, #tpu.memory_space<vmem>>, vector<1x1x2x128xf32>
    %112 = vector.shape_cast %111 : vector<1x1x2x128xf32> to vector<2x128xf32>
    %113 = vector.shape_cast %110 : vector<2x128xf32> to vector<1x1x2x128xf32>
    tpu.vector_store %arg5[%c0_58, %c2_59, %c0_60, %c0_61], %113 {strides = array<i32>} : memref<1x3x2x128xf32, #tpu.memory_space<vmem>>, vector<1x1x2x128xf32>,
    return
  }
  func.func @transform_0(%arg0: i32) -> (i32, i32, i32, i32) {
    %c0_i32 = arith.constant 0 : i32
    %c0_i32_0 = arith.constant 0 : i32
    %c0_i32_1 = arith.constant 0 : i32
    %c0_i32_2 = arith.constant 0 : i32
    return %c0_i32, %c0_i32_0, %arg0, %c0_i32_1 : i32, i32, i32, i32
  }
  func.func @transform_1(%arg0: i32) -> (i32, i32, i32, i32) {
    %c0_i32 = arith.constant 0 : i32
    %c0_i32_0 = arith.constant 0 : i32
    %c0_i32_1 = arith.constant 0 : i32
    %c0_i32_2 = arith.constant 0 : i32
    return %c0_i32, %c0_i32_0, %arg0, %c0_i32_1 : i32, i32, i32, i32
  }
  func.func @transform_2(%arg0: i32) -> (i32, i32, i32, i32) {
    %c0_i32 = arith.constant 0 : i32
    %c0_i32_0 = arith.constant 0 : i32
    %c0_i32_1 = arith.constant 0 : i32
    %c0_i32_2 = arith.constant 0 : i32
    return %arg0, %c0_i32, %c0_i32_0, %c0_i32_1 : i32, i32, i32, i32
  }
  func.func @transform_3(%arg0: i32) -> (i32, i32, i32, i32) {
    %c0_i32 = arith.constant 0 : i32
    %c0_i32_0 = arith.constant 0 : i32
    %c0_i32_1 = arith.constant 0 : i32
    %c0_i32_2 = arith.constant 0 : i32
    return %arg0, %c0_i32, %c0_i32_0, %c0_i32_1 : i32, i32, i32, i32
  }
  func.func @transform_4(%arg0: i32) -> (i32, i32, i32, i32) {
    %c0_i32 = arith.constant 0 : i32
    %c0_i32_0 = arith.constant 0 : i32
    %c0_i32_1 = arith.constant 0 : i32
    %c0_i32_2 = arith.constant 0 : i32
    return %arg0, %c0_i32, %c0_i32_0, %c0_i32_1 : i32, i32, i32, i32
  }
  func.func @transform_5(%arg0: i32) -> (i32, i32, i32, i32) {
    %c0_i32 = arith.constant 0 : i32
    %c0_i32_0 = arith.constant 0 : i32
    %c0_i32_1 = arith.constant 0 : i32
    %c0_i32_2 = arith.constant 0 : i32
    return %c0_i32, %c0_i32_0, %arg0, %c0_i32_1 : i32, i32, i32, i32
  }
}

</mosaic_0001>

<bundles_post_ra>
// kernel: tpu_custom_call.1
= control target key start
LH: loop header
LB: loop body
LE: loop exit
PB: predicated region body
PF: predicated region fallthrough
CT: control target
= control target key end

     0   :  { %s1425_s0 = inlined_call_operand.hbm [shape: f32[2,1,32,128], index: 0, kind: input, shape index: {}]   ;;  %s1426_s1 = inlined_call_operand.hbm [shape: f32[2,3,32,128], index: 1, kind: input, shape index: {}]   ;;  %s1427_s2 = inlined_call_operand.vmem [shape: f32[4,2,1,128], index: 2, kind: input, shape index: {}]   ;;  %s1428_s3 = inlined_call_operand.vmem [shape: f32[4,2,3,128], index: 3, kind: input, shape index: {}]   ;;  %s1429_s4 = inlined_call_operand.hbm [shape: f32[4,3,2,128], index: 4, kind: output, shape index: {0}]   ;;  %s1430_s5 = inlined_call_operand.hbm [shape: f32[2,1,32,128], index: 5, kind: output, shape index: {1}]  }
   0x1   :  { %1435 = sst [smem:[#allocation17_spill]] %s1425_s0 }
   0x2   :  { %11 = vsyncpa [#allocation3], 0 }
   0x3   :  { %13 = vsyncpa [#allocation3 + $0x1], 0 }
   0x4   :  { %14 = vsyncpa [#allocation6], 0 }
   0x5   :  { %16 = vsyncpa [#allocation6 + $0x1], 0 }
   0x6   :  { %17 = vsyncpa [#allocation4], 0 }
   0x7   :  { %19 = vsyncpa [#allocation4 + $0x1], 0 }
   0x8   :  { %20 = vsyncpa [#allocation9], 0 }
   0x9   :  { %22 = vsyncpa [#allocation9 + $0x1], 0  ;;  %s1092_s18 = smov 0   ;;  %s1094_s19 = smov 0  }
   0xa   :  { %s1096_s20 = smov 0   ;;  %s1098_s21 = smov 0  }
   0xb LB: > { %1436 = sst [smem:[#allocation14_spill]] %s1047_s20  ;;  %s1113_s22 = sadd.s32 4294967295, %s1051_s21   ;;  %s1051_s21 = sphi %s1098_s21, %s1453_s21   ;;  %s1047_s20 = sphi %s1096_s20, %s1455_s20   ;;  %s1043_s19 = sphi %s1094_s19, %s1457_s19   ;;  %s1039_s18 = sphi %s1092_s18, %s1456_s18  }
   0xc   : > { %s780_s23 = sadd.s32 4294967294, %s1051_s21   ;;  %s1117_s24 = sadd.s32 1, %s1051_s21  }
   0xd   : > { %1437 = sst [smem:[#allocation15_spill]] %s1117_s24  ;;  %s35_s25 = sadd.s32 1, %s1047_s20 }
   0xe   : > { %s32_s26 = ssub.s32 %s1051_s21, %s1117_s24  ;;  %p42_p0 = scmp.ne.s32.totalorder %s1047_s20, %s1043_s19 }
   0xf   : > { %p33_p1 = scmp.eq.s32.totalorder %s32_s26, 0  ;;  %p43_p2 = scmp.eq.s32.totalorder %s1051_s21, 0 }
  0x10   : > { %p48_p3 = scmp.ne.s32.totalorder %s1043_s19, %s1039_s18  ;;  %p49_p4 = scmp.eq.s32.totalorder %s1113_s22, 0 }
  0x11   : > { %s1129_s27 = scalar_select %p33_p1, %s1047_s20, %s35_s25  }
  0x12   : > { %p1131_p5 = por %p43_p2, %p42_p0  ;;  %p1135_p6 = por %p49_p4, %p48_p3 }
  0x13   : > { %1438 = sst [smem:[#allocation16_spill]] %s1129_s27  ;;  %p150_p7 = scmp.eq.s32.totalorder %s1113_s22, 3 }
  0x14   : > { %p156_p8 = scmp.eq.s32.totalorder %s780_s23, 3  ;;  %p830_p9 = scmp.lt.s32.totalorder %s1051_s21, 4 }
  0x15   : > { %p1141_p10 = por %p150_p7, %p42_p0  ;;  %s1150_s7 = sand.u32 1, %s1047_s20  }
  0x16   : > { %p1145_p11 = por %p156_p8, %p48_p3  ;;  %s1431_s8 = sshll.u32 %s1051_s21, 3 }
  0x17   : > { %s783_s9 = sshll.u32 %s1150_s7, 4  ;;  %s1443_s0 = sld [smem:[#allocation17_spill]] }
  0x18   : > { %s206_s14 = scalar_lea.vmem [#allocation2], %s783_s9  ;;  %p1161_p12 = pnand %p830_p9, %p1131_p5 }
  0x19   : > { %s213_s15 = sshll.u32 %s206_s14, 4  ;;  %p786_p13 = scmp.ge.s32.totalorder %s1051_s21, 1  ;;  %s214_s15 = int_to_ptr.vmem [resolvable:$true] %s213_s15 }
  0x1a   : > { %s203_s17 = scalar_lea.sflag [#allocation3], %s1150_s7  ;;  %p893_p1 = pneg %p1161_p12 }
  0x1d   : > { %s210_s12 = scalar_lea.hbm %s1443_s0, %s1431_s8  ;;  %s896_s9 = scalar_lea.hbm %s1443_s0, 64 }
  0x1e   : > { %s211_s13 = sshll.u32 %s210_s12, 4  ;;  %s212_s13 = int_to_ptr.hbm [resolvable:$true] %s211_s13 }
  0x1f   : > { %s889_s23 = sshra.s32 %s212_s13, 4  ;;  %s890_s23 = int_to_ptr.hbm [resolvable:$true] %s889_s23 }
  0x20   : > { %s891_s25 = scalar_lea.hbm %s890_s23, 16  ;;  %p897_p4 = scmp.lt.s32.totalorder %s890_s23, %s1443_s0 }
  0x21   : > { %p892_p0 = scmp.ne.s32.totalorder %s890_s23, %s891_s25  ;;  %p898_p5 = scmp.lt.s32.totalorder %s896_s9, %s891_s25 }
  0x23   : > { %p894_p2 = pnand %p893_p1, %p892_p0  ;;  %p899_p7 = por %p898_p5, %p897_p4 }
  0x25   : > { %p895_p3 = pneg %p894_p2 }
  0x27   : > { %p900_p8 = pnand %p899_p7, %p895_p3 }
  0x29   : > { %903 = shalt.err (!%p900_p8)
}
  0x2a   : > { %s1053_s12 = smov 512   ;;  %s1054_s14 = smov 128  }
  0x2b   : > { %s1055_s8 = smov 8   ;;  %p257_p9 = scmp.lt.s32.totalorder %s1051_s21, 5 }
  0x2c   : > { %819 = dma.hbm_to_vmem [thread:$0]  (!%p1161_p12), %s212_s13, 256, %s214_s15, %s203_s17, %s1053_s12, %s1054_s14, %s1055_s8  }
  0x2d   : > { %s804_s23 = smul.u32 48, %s1150_s7  ;;  %s1445_s25 = sshll.u32 %s1051_s21, 3 }
  0x2e   : > { %s231_s9 = scalar_lea.hbm %s1426_s1, %s1445_s25  ;;  %p1191_p0 = pnand %p786_p13, %p257_p9 }
  0x2f   : > { %s232_s11 = sshll.u32 %s231_s9, 4  ;;  %s227_s0 = scalar_lea.vmem [#allocation5], %s804_s23  ;;  %s233_s11 = int_to_ptr.hbm [resolvable:$true] %s232_s11 }
  0x30   : > { %s234_s27 = sshll.u32 %s227_s0, 4  ;;  %s224_s20 = scalar_lea.sflag [#allocation6], %s1150_s7  ;;  %s235_s27 = int_to_ptr.vmem [resolvable:$true] %s234_s27 }
  0x31   : > { %s919_s24 = sshra.s32 %s233_s11, 4  ;;  %s926_s25 = scalar_lea.hbm %s1426_s1, 192  ;;  %s920_s24 = int_to_ptr.hbm [resolvable:$true] %s919_s24 }
  0x32   : > { %s921_s13 = scalar_lea.hbm %s920_s24, 48  ;;  %p927_p13 = scmp.lt.s32.totalorder %s920_s24, %s1426_s1 }
  0x33   : > { %p922_p2 = scmp.ne.s32.totalorder %s920_s24, %s921_s13  ;;  %p928_p5 = scmp.lt.s32.totalorder %s926_s25, %s921_s13 }
  0x35   : > { %p924_p3 = pnand %p922_p2, %p893_p1  ;;  %p929_p7 = por %p928_p5, %p927_p13 }
  0x37   : > { %p925_p4 = pneg %p924_p3 }
  0x39   : > { %p930_p8 = pnand %p929_p7, %p925_p4 }
  0x3b   : > { %933 = shalt.err (!%p930_p8)
}
  0x3c   : > { %822 = dma.hbm_to_vmem [thread:$0]  (!%p1161_p12), %s233_s11, 768, %s235_s27, %s224_s20, %s1053_s12, %s1054_s14, %s1055_s8  }
  0x3d   : > { %261 = sbr.rel (%p1191_p0) target bundleno = 236 (0xec), region = 36  ;;  %s1212_s0 = sand.u32 (!%p1191_p0), 1, %s1043_s19  }
  0x3e   : > { %s787_s24 = sshll.u32 (!%p1191_p0), %s1212_s0, 4  ;;  %s264_s7 = scalar_lea.sflag (!%p1191_p0), [#allocation3], %s1212_s0 }
  0x3f   : > { %s267_s23 = scalar_lea.vmem (!%p1191_p0), [#allocation2], %s787_s24 }
  0x42   : > { %1022 = dma.done.wait (%p1135_p6), %s264_s7, 256  }
  0x43   : > { %1024 = vsyncadd (%p1135_p6), %s264_s7, 4294967040  ;;  %s805_s20 = smul.u32 48, %s1212_s0  ;;  %s274_s27 = scalar_lea.sflag [#allocation6], %s1212_s0 }
  0x45   : > { %s277_s8 = scalar_lea.vmem [#allocation5], %s805_s20 }
  0x46   : > { %1026 = dma.done.wait (%p1135_p6), %s274_s27, 768  }
  0x47   : > { %1028 = vsyncadd (%p1135_p6), %s274_s27, 4294966528  ;;  %v1228_v0 = vld [vmem:[%s277_s8 + $0x8] sm:$0xff]  ;;  %v1230_v1 = vld [vmem:[%s277_s8] sm:$0xff]  ;;  %s1056_s16 = smov 127   ;;  %p324_p6 = scmp.lt.s32.totalorder %s1113_s22, 3  ;;  %vm566_vm0 = vcmask 1046528  }
  0x48   : > { %404 = vrot.lane.b32.xlu1 %v1228_v0, %s1056_s16  ;;  %377 = vrot.lane.b32.xlu0 %v1230_v1, %s1056_s16  ;;  %v1234_v2 = vld [vmem:[%s277_s8 + $0x10] sm:$0xff]  ;;  %v1237_v3 = vld [vmem:[%s277_s8 + $0x20] sm:$0xff]  ;;  %v414_v8 = vrot.slane %v1228_v0, 1  ;;  %v387_v9 = vrot.slane %v1230_v1, 1  ;;  %p524_p12 = scmp.gt.s32.totalorder %s1113_s22, 0  ;;  %vm544_vm2 = vcmask 1041409  }
  0x49   : > { %437 = vrot.lane.b32.xlu2 %v1234_v2, %s1056_s16  ;;  %v1239_v4 = vld [vmem:[%s277_s8 + $0x18] sm:$0xff]  ;;  %v1243_v5 = vld [vmem:[%s277_s8 + $0x28] sm:$0xff]  ;;  %v1246_v6 = vld [vmem:[%s267_s23] sm:$0xff]  ;;  %v415_v10 = vrot.slane %v1237_v3, 1  ;;  %v447_v14 = vrot.slane %v1234_v2, 1  ;;  %s1265_s29 = scalar_select %p324_p6, %s1113_s22, 3 }
  0x4a   : > { %v1248_v7 = vld [vmem:[%s267_s23 + $0x8] sm:$0xff]  ;;  %v388_v11 = vrot.slane %v1239_v4, 1  ;;  %v418_v12 = vsub.f32 %v1228_v0, %v414_v8  ;;  %v391_v13 = vsub.f32 %v1230_v1, %v387_v9  ;;  %v448_v17 = vrot.slane %v1243_v5, 1  ;;  %s525_s25 = scalar_select %p524_p12, 1, 0 }
  0x4b   : > { %v419_v15 = vsub.f32 %v1237_v3, %v415_v10  ;;  %v451_v20 = vsub.f32 %v1234_v2, %v447_v14  ;;  %s803_s12 = sshll.u32 %s1265_s29, 3  ;;  %v490_v55 = vrot.slane %v1246_v6, 1  ;;  %v491_v57 = vrot.slane %v1248_v7, 1  ;;  %s789_s11 = sshll.u32 %s1265_s29, 1 }
  0x4c   : > { %v392_v16 = vsub.f32 %v1239_v4, %v388_v11  ;;  %v420_v18 = vand.u32 2147483647, %v418_v12  ;;  %v393_v19 = vand.u32 2147483647, %v391_v13  ;;  %v452_v23 = vsub.f32 %v1243_v5, %v448_v17  ;;  %s332_s10 = scalar_lea.vmem %s1428_s3, %s803_s12  ;;  %s327_s17 = scalar_lea.vmem %s1427_s2, %s789_s11 }
  0x4d   : > { %v421_v21 = vand.u32 2147483647, %v419_v15  ;;  %v453_v25 = vand.u32 2147483647, %v451_v20  ;;  %v422_v29 = vld [vmem:[%s332_s10 + $0x1] sm:$0x1]  ;;  %v494_v59 = vsub.f32 %v1246_v6, %v490_v55  ;;  %v495_v61 = vsub.f32 %v1248_v7, %v491_v57 }
  0x4e   : > { %v394_v22 = vand.u32 2147483647, %v392_v16  ;;  %v430_v24 = vadd.f32 %v420_v18, %v393_v19  ;;  %v454_v27 = vand.u32 2147483647, %v452_v23  ;;  %v395_v30 = vld [vmem:[%s332_s10] sm:$0x1]  ;;  %v424_v34 = vsub.f32 %v422_v29, %v1228_v0 }
  0x4f   : > { %v423_v32 = vld [vmem:[%s332_s10 + $0x5] sm:$0x1]  ;;  %v396_v33 = vld [vmem:[%s332_s10 + $0x4] sm:$0x1]  ;;  %v397_v35 = vsub.f32 %v395_v30, %v1230_v1  ;;  %v455_v37 = vld [vmem:[%s332_s10 + $0x2] sm:$0x1] }
  0x50   : > { %406 = vrot.lane.b32.xlu1 %v1237_v3, %s1056_s16  ;;  %379 = vrot.lane.b32.xlu0 %v1239_v4, %s1056_s16  ;;  %v431_v26 = vadd.f32 %v421_v21, %v394_v22  ;;  %v463_v28 = vadd.f32 %v453_v25, %v430_v24  ;;  %v425_v39 = vsub.f32 %v423_v32, %v1237_v3  ;;  %v456_v41 = vld [vmem:[%s332_s10 + $0x6] sm:$0x1]  ;;  %v426_v42 = vand.u32 2147483647, %v424_v34  ;;  %v508_v18 = vld [vmem:[%s327_s17] sm:$0x1] }
  0x51   : > { %439 = vrot.lane.b32.xlu2 %v1243_v5, %s1056_s16  ;;  %v398_v40 = vsub.f32 %v396_v33, %v1239_v4  ;;  %v399_v43 = vand.u32 2147483647, %v397_v35  ;;  %v457_v44 = vsub.f32 %v455_v37, %v1234_v2  ;;  %v458_v49 = vsub.f32 %v456_v41, %v1243_v5  ;;  %v509_v24 = vld [vmem:[%s327_s17 + $0x1] sm:$0x1]  ;;  %s806_s26 = smul.u32 6, %s1212_s0  ;;  %s800_s28 = sshll.u32 %s1113_s22, 3 }
  0x52   : > { %v464_v31 = vadd.f32 %v454_v27, %v431_v26  ;;  %v498_v36 = vsub.f32 0.0, %v463_v28  ;;  %v427_v47 = vand.u32 2147483647, %v425_v39  ;;  %v496_v8 = vand.u32 2147483647, %v494_v59  ;;  %s1340_s20 = scalar_lea.hbm %s1430_s5, %s800_s28  ;;  %s323_s8 = scalar_lea.vmem [#allocation8], %s787_s24 }
  0x53   : > { %v400_v48 = vand.u32 2147483647, %v398_v40  ;;  %v432_v50 = vadd.f32 %v426_v42, %v399_v43  ;;  %v459_v51 = vand.u32 2147483647, %v457_v44  ;;  %v460_v56 = vand.u32 2147483647, %v458_v49 }
  0x54   : > { %v499_v38 = vsub.f32 0.0, %v464_v31  ;;  %v500_v45 = vmul.f32 0.33333334, %v498_v36  ;;  %v497_v9 = vand.u32 2147483647, %v495_v61  ;;  %v510_v25 = vsub.f32 %v508_v18, %v1246_v6  ;;  %s1344_s27 = scalar_lea.vmem [#allocation7], %s806_s26 }
  0x55   : > { %v433_v54 = vadd.f32 %v427_v47, %v400_v48  ;;  %v465_v58 = vadd.f32 %v459_v51, %v432_v50  ;;  %v335_v19 = vmul.f32 9.99, %v1246_v6  ;;  %v336_v23 = vmul.f32 9.99, %v1248_v7  ;;  %s626_s29 = sshll.u32 %s1340_s20, 4  ;;  %s596_s24 = scalar_lea.sflag [#allocation9], %s1212_s0  ;;  %s1368_s29 = int_to_ptr.hbm [resolvable:$true] %s626_s29 }
  0x56   : > { %v501_v46 = vmul.f32 0.33333334, %v499_v38  ;;  %v502_v52 = vmul.f32 1.442695, %v500_v45  ;;  %v511_v30 = vsub.f32 %v509_v24, %v1248_v7  ;;  %v512_v31 = vand.u32 2147483647, %v510_v25 }
  0x57   : > { %v466_v60 = vadd.f32 %v460_v56, %v433_v54  ;;  %v514_v62 = vsub.f32 0.0, %v465_v58  ;;  %v1289_v28 = vadd.f32 0.01, %v335_v19  ;;  %v1291_v29 = vadd.f32 0.01, %v336_v23  ;;  %s963_s12 = sshra.s32 %s1368_s29, 4  ;;  %s964_s12 = int_to_ptr.hbm [resolvable:$true] %s963_s12 }
  0x58   : > { %371 = vrot.lane.b32.xlu0 %v1246_v6, %s1056_s16  ;;  %373 = vrot.lane.b32.xlu1 %v1248_v7, %s1056_s16  ;;  %v504_v53 = vmul.f32 1.442695, %v501_v46  ;;  %873 = vpow2.f32 %v502_v52  ;;  %v513_v36 = vand.u32 2147483647, %v511_v30  ;;  %v530_v47 = vrot.slane %v1246_v6, 4  ;;  %s624_s16 = sshll.u32 %s323_s8, 4  ;;  %p970_p2 = scmp.lt.s32.totalorder %s964_s12, %s1430_s5  ;;  %s1366_s16 = int_to_ptr.vmem [resolvable:$true] %s624_s16 }
  0x59   : > { %v515_v10 = vsub.f32 0.0, %v466_v60  ;;  %v516_v12 = vmul.f32 0.33333334, %v514_v62  ;;  %v536_v48 = vrot.slane %v1248_v7, 4  ;;  %v526_v54 = vstv %s525_s25  ;;  %s965_s14 = scalar_lea.hbm %s964_s12, 16  ;;  %s969_s11 = scalar_lea.hbm %s1430_s5, 64 }
  0x5a   : > { %875 = vpow2.f32 %v504_v53  ;;  %vm1307_vm1 = vcmp.eq.s32.totalorder %v526_v54, 1  ;;  %vm344_vm3 = vweird.f32 %v1289_v28  ;;  %vm359_vm7 = vweird.f32 %v1291_v29  ;;  %p966_p1 = scmp.ne.s32.totalorder %s964_s12, %s965_s14  ;;  %p971_p3 = scmp.lt.s32.totalorder %s969_s11, %s965_s14 }
  0x5b   : > { %v517_v15 = vmul.f32 0.33333334, %v515_v10  ;;  %v518_v17 = vmul.f32 1.442695, %v516_v12 }
  0x5c   : > { %p967_p9 = pnand %p966_p1, %p1141_p10  ;;  %p972_p4 = por %p971_p3, %p970_p2 }
  0x5d   : > { %v520_v21 = vmul.f32 1.442695, %v517_v15  ;;  %877 = vpow2.f32 %v518_v17 }
  0x5e   : > { %v874_v63 = vpop.eup %873  ;;  %p968_p0 = pneg %p967_p9 }
  0x5f   : > { %v506_v13 = vmul.f32 %v874_v63, %v496_v8  ;;  %879 = vpow2.f32 %v520_v21 }
  0x60   : > { %v876_v11 = vpop.eup %875  ;;  %881 = vrcp.f32 %v1289_v28  ;;  %p973_p13 = pnand %p972_p4, %p968_p0 }
  0x61   : > { %v507_v14 = vmul.f32 %v876_v11, %v497_v9  ;;  %v567_v20 = vsel %vm566_vm0, %v506_v13, 0.0  ;;  %883 = vrcp.f32 %v1291_v29 }
  0x62   : > { %v568_v26 = vrot.slane %v567_v20, 4 }
  0x63   : > { %v574_v22 = vsel %vm566_vm0, %v507_v14, 0.0  ;;  %v878_v35 = vpop.eup %877 }
  0x64   : > { %v575_v27 = vrot.slane %v574_v22, 4  ;;  %v569_v32 = vadd.f32 %v568_v26, %v567_v20  ;;  %v522_v40 = vmul.f32 %v878_v35, %v512_v31 }
  0x65   : > { %v880_v38 = vpop.eup %879 }
  0x66   : > { %v576_v33 = vadd.f32 %v575_v27, %v574_v22  ;;  %v570_v41 = vrot.slane %v569_v32, 2  ;;  %v523_v49 = vmul.f32 %v880_v38, %v513_v36  ;;  %v1303_v51 = vpop.eup %881  ;;  %v528_v59 = vsel %vm1307_vm1, %v522_v40, 0.0 }
  0x67   : > { %v1305_v55 = vpop.eup %883  ;;  %v340_v8 = vmul.f32 %v1303_v51, %v1289_v28  ;;  %vm345_vm4 = vweird.f32 %v1303_v51  ;;  %v348_v40 = vand.u32 2147483647, %v1289_v28 }
  0x68   : > { %v577_v42 = vrot.slane %v576_v33, 2  ;;  %v571_v60 = vadd.f32 %v570_v41, %v569_v32  ;;  %v529_v10 = vsel %vm1307_vm1, %v523_v49, 0.0  ;;  %v355_v12 = vmul.f32 %v1305_v55, %v1291_v29  ;;  %vm1331_vm5 = vmor %vm344_vm3, %vm345_vm4 }
  0x69   : > { %v341_v18 = vsub.f32 1.0, %v340_v8  ;;  %v350_v41 = vand.u32 2147483648, %v1289_v28  ;;  %vm349_vm6 = vcmp.eq.f32.partialorder %v348_v40, 8.507059e+37  ;;  %vm360_vm8 = vweird.f32 %v1305_v55 }
  0x6a   : > { %v578_v57 = vadd.f32 %v577_v42, %v576_v33  ;;  %v572_v11 = vrot.slane %v571_v60, 1  ;;  %vm1359_vm9 = vmor %vm359_vm7, %vm360_vm8 }
  0x6b   : > { %v342_v26 = vmul.f32 %v1303_v51, %v341_v18 }
  0x6c   : > { %v579_v63 = vrot.slane %v578_v57, 1  ;;  %v573_v22 = vadd.f32 %v572_v11, %v571_v60 }
  0x6d   : > { %v343_v36 = vadd.f32 %v1303_v51, %v342_v26 }
  0x6e   : > { %v580_v17 = vadd.f32 %v579_v63, %v578_v57  ;;  %v581_v32 = vadd.f32 %v573_v22, %v528_v59 }
  0x70   : > { %v582_v25 = vadd.f32 %v580_v17, %v529_v10 }
  0x72   : > { %v585_v35 = vrot.slane %v582_v25, 7 }
  0x74   : > { %v586_v38 = vsel %vm544_vm2, %v585_v35, %v581_v32 }
  0x75   : > { %797 = vst [vmem:[%s1344_s27 + $0x4] sm:$0x3] %v586_v38 }
  0xa3   : > { %v438_v16 = vpop.permute.xlu2 %437 }
  0xa4   : > { %v441_v37 = vsub.f32 %v1234_v2, %v438_v16  ;;  %v481_v2 = vlaneseq }
  0xa6   : > { %v443_v50 = vand.u32 2147483647, %v441_v37 }
  0xab   : > { %v440_v34 = vpop.permute.xlu2 %439 }
  0xac   : > { %v442_v39 = vsub.f32 %v1243_v5, %v440_v34 }
  0xae   : > { %v444_v53 = vand.u32 2147483647, %v442_v39 }
  0xba   : > { %v405_v43 = vpop.permute.xlu1 %404  ;;  %v378_v44 = vpop.permute.xlu0 %377 }
  0xbb   : > { %v408_v45 = vsub.f32 %v1228_v0, %v405_v43  ;;  %v381_v46 = vsub.f32 %v1230_v1, %v378_v44  ;;  %v531_v0 = vadd.f32 %v530_v47, %v1246_v6  ;;  %v537_v1 = vadd.f32 %v536_v48, %v1248_v7 }
  0xbc   : > { %v347_v43 = vsel %vm1331_vm5, %v1303_v51, %v343_v36  ;;  %v356_v44 = vsub.f32 1.0, %v355_v12  ;;  %v482_v47 = vand.u32 127, %v481_v2 }
  0xbd   : > { %v410_v5 = vand.u32 2147483647, %v408_v45  ;;  %v383_v52 = vand.u32 2147483647, %v381_v46  ;;  %v532_v61 = vrot.slane %v531_v0, 2  ;;  %v538_v62 = vrot.slane %v537_v1, 2 }
  0xbe   : > { %v351_v45 = vor.u32 1.1754944e-38, %v350_v41  ;;  %v357_v49 = vmul.f32 %v1305_v55, %v356_v44  ;;  %vm483_vm11 = vcmp.lt.s32.totalorder %v482_v47, 127 }
  0xbf   : > { %v428_v58 = vadd.f32 %v410_v5, %v383_v52  ;;  %v533_v15 = vadd.f32 %v532_v61, %v531_v0  ;;  %v539_v16 = vadd.f32 %v538_v62, %v537_v1  ;;  %v363_v5 = vand.u32 2147483647, %v1291_v29 }
  0xc0   : > { %v365_v52 = vand.u32 2147483648, %v1291_v29  ;;  %v358_v0 = vadd.f32 %v1305_v55, %v357_v49 }
  0xc1   : > { %v461_v9 = vadd.f32 %v443_v50, %v428_v58  ;;  %v534_v23 = vrot.slane %v533_v15, 1  ;;  %v540_v24 = vrot.slane %v539_v16, 1  ;;  %v352_v50 = vsel %vm349_vm6, %v351_v45, %v347_v43 }
  0xc2   : > { %v407_v13 = vpop.permute.xlu1 %406  ;;  %v380_v14 = vpop.permute.xlu0 %379  ;;  %369 = vst [vmem:[%s323_s8] sm:$0xff] %v352_v50  ;;  %vm364_vm10 = vcmp.eq.f32.partialorder %v363_v5, 8.507059e+37  ;;  %v362_v29 = vsel %vm1359_vm9, %v1305_v55, %v358_v0 }
  0xc3   : > { %v471_v19 = vsub.f32 0.0, %v461_v9  ;;  %v409_v20 = vsub.f32 %v1237_v3, %v407_v13  ;;  %v382_v21 = vsub.f32 %v1239_v4, %v380_v14  ;;  %v535_v33 = vadd.f32 %v534_v23, %v533_v15 }
  0xc4   : > { %v541_v34 = vadd.f32 %v540_v24, %v539_v16 }
  0xc5   : > { %v473_v27 = vmul.f32 0.33333334, %v471_v19  ;;  %v411_v30 = vand.u32 2147483647, %v409_v20  ;;  %v384_v31 = vand.u32 2147483647, %v382_v21 }
  0xc6   : > { %v545_v4 = vsel %vm544_vm2, %v541_v34, %v535_v33 }
  0xc7   : > { %v475_v3 = vmul.f32 1.442695, %v473_v27  ;;  %v429_v37 = vadd.f32 %v411_v30, %v384_v31  ;;  %547 = vst [vmem:[%s1344_s27] sm:$0x3] %v545_v4 }
  0xc9   : > { %885 = vpow2.f32 %v475_v3  ;;  %v462_v42 = vadd.f32 %v444_v53, %v429_v37 }
  0xca   : > { %v372_v28 = vpop.permute.xlu0 %371  ;;  %v374_v56 = vpop.permute.xlu1 %373 }
  0xcb   : > { %v472_v46 = vsub.f32 0.0, %v462_v42  ;;  %v467_v48 = vsub.f32 %v1246_v6, %v372_v28  ;;  %v366_v6 = vor.u32 1.1754944e-38, %v365_v52  ;;  %v468_v58 = vsub.f32 %v1248_v7, %v374_v56 }
  0xcd   : > { %v474_v53 = vmul.f32 0.33333334, %v472_v46  ;;  %v469_v54 = vand.u32 2147483647, %v467_v48  ;;  %v367_v59 = vsel %vm364_vm10, %v366_v6, %v362_v29 }
  0xce   : > { %370 = vst [vmem:[%s323_s8 + $0x8] sm:$0xff] %v367_v59 }
  0xcf   : > { %v886_v2 = vpop.eup %885  ;;  %v477_v1 = vmul.f32 1.442695, %v474_v53 }
  0xd0   : > { %v479_v57 = vmul.f32 %v886_v2, %v469_v54 }
  0xd1   : > { %887 = vpow2.f32 %v477_v1 }
  0xd2   : > { %v486_v60 = vsel %vm483_vm11, %v479_v57, 0.0 }
  0xd3   : > { %976 = shalt.err (!%p973_p13)
}
  0xd4   : > { %s1057_s17 = smov 128   ;;  %s1058_s25 = smov 512   ;;  %v548_v7 = vrot.slane %v486_v60, 4  ;;  %v470_v55 = vand.u32 2147483647, %v468_v58 }
  0xd5   : > { %s1059_s26 = smov 8   ;;  %s807_s28 = smul.u32 6, %s1113_s22 }
  0xd6   : > { %813 = dma.vmem_to_hbm [thread:$0]  (%p1141_p10), %s1366_s16, 256, %s1368_s29, %s596_s24, %s1057_s17, %s1058_s25, %s1059_s26   ;;  %v549_v61 = vadd.f32 %v548_v7, %v486_v60 }
  0xd7   : > { %v888_v62 = vpop.eup %887  ;;  %s607_s20 = scalar_lea.hbm %s1429_s4, %s807_s28  ;;  %s608_s8 = sshll.u32 %s1344_s27, 4  ;;  %s609_s8 = int_to_ptr.vmem [resolvable:$true] %s608_s8 }
  0xd8   : > { %v480_v63 = vmul.f32 %v888_v62, %v470_v55  ;;  %v550_v8 = vrot.slane %v549_v61, 2  ;;  %s610_s16 = sshll.u32 %s607_s20, 4  ;;  %s591_s22 = scalar_lea.sflag [#allocation4], %s1212_s0  ;;  %s611_s16 = int_to_ptr.hbm [resolvable:$true] %s610_s16 }
  0xd9   : > { %s991_s29 = sshra.s32 %s611_s16, 4  ;;  %s997_s9 = scalar_lea.hbm %s1429_s4, 24  ;;  %s992_s29 = int_to_ptr.hbm [resolvable:$true] %s991_s29 }
  0xda   : > { %v487_v9 = vsel %vm483_vm11, %v480_v63, 0.0  ;;  %v551_v11 = vadd.f32 %v550_v8, %v549_v61  ;;  %s993_s24 = scalar_lea.hbm %s992_s29, 6  ;;  %p998_p6 = scmp.lt.s32.totalorder %s992_s29, %s1429_s4 }
  0xdb   : > { %v554_v10 = vrot.slane %v487_v9, 4  ;;  %p994_p5 = scmp.ne.s32.totalorder %s992_s29, %s993_s24  ;;  %p999_p12 = scmp.lt.s32.totalorder %s997_s9, %s993_s24 }
  0xdc   : > { %v552_v14 = vrot.slane %v551_v11, 1 }
  0xdd   : > { %v555_v12 = vadd.f32 %v554_v10, %v487_v9  ;;  %p995_p7 = pnand %p994_p5, %p1141_p10  ;;  %p1000_p1 = por %p999_p12, %p998_p6 }
  0xde   : > { %v553_v17 = vadd.f32 %v552_v14, %v551_v11 }
  0xdf   : > { %v556_v13 = vrot.slane %v555_v12, 2  ;;  %p996_p8 = pneg %p995_p7 }
  0xe1   : > { %v557_v15 = vadd.f32 %v556_v13, %v555_v12  ;;  %p1001_p9 = pnand %p1000_p1, %p996_p8 }
  0xe3   : > { %v558_v16 = vrot.slane %v557_v15, 1 }
  0xe5   : > { %v559_v18 = vadd.f32 %v558_v16, %v557_v15 }
  0xe7   : > { %v562_v19 = vsel %vm544_vm2, %v559_v18, %v553_v17 }
  0xe8   : > { %796 = vst [vmem:[%s1344_s27 + $0x2] sm:$0x3] %v562_v19 }
  0xe9   : > { %1004 = shalt.err (!%p1001_p9)
}
  0xea   : > { %s1060_s0 = smov 32   ;;  %s1061_s27 = smov 2  }
  0xeb   : > { %812 = dma.vmem_to_hbm [thread:$0]  (%p1141_p10), %s609_s8, 96, %s611_s16, %s591_s22, %s1060_s0, %s1060_s0, %s1061_s27  }
  0xec PF: > { %p831_p0 = scmp.ge.s32.totalorder %s1051_s21, 2  ;;  %s641_s13 = sand.u32 1, %s1039_s18  }
  0xed   : > { %s642_s15 = scalar_lea.sflag [#allocation4], %s641_s13 }
  0xee   : > { %p824_p2 = pnand %p831_p0, %p1145_p11 }
  0xf0   : > { %p825_p3 = pneg %p824_p2 }
  0xf2   : > { %1030 = dma.done.wait (%p825_p3), %s642_s15, 96  }
  0xf3   : > { %1032 = vsyncadd (%p825_p3), %s642_s15, 4294967200  ;;  %s652_s17 = scalar_lea.sflag [#allocation9], %s641_s13 }
  0xf4   : > { %1034 = dma.done.wait (%p825_p3), %s652_s17, 256  }
  0xf5   : > { %1036 = vsyncadd (%p825_p3), %s652_s17, 4294967040  ;;  %s1453_s21 = sld [smem:[#allocation15_spill]]  ;;  %s1456_s18 = smov %s1043_s19 }
  0xf6   : > { %s1454_s25 = sld [smem:[#allocation14_spill]] }
  0xf7   : > { %s1455_s20 = sld [smem:[#allocation16_spill]] }
  0xfb   : > { %p25_p10 = scmp.ge.s32.totalorder %s1453_s21, 6  }
  0xfc   : > { %s1457_s19 = smov %s1454_s25 }
  0xfd   :  { %27 = sbr.rel (!%p25_p10) target bundleno = 11 (0xb), region = 121 }
 0x102   :  { %658 = vsyncpa [#allocation3], 1 }
 0x103   :  { %660 = vsyncpa [#allocation3 + $0x1], 1 }
 0x104   :  { %661 = vsyncpa [#allocation6], 1 }
 0x105   :  { %663 = vsyncpa [#allocation6 + $0x1], 1 }
 0x106   :  { %664 = vsyncpa [#allocation4], 1 }
 0x107   :  { %666 = vsyncpa [#allocation4 + $0x1], 1 }
 0x108   :  { %667 = vsyncpa [#allocation9], 1 }
 0x109   :  { %669 = vsyncpa [#allocation9 + $0x1], 1 }

</bundles_post_ra>
